<compile_context>
chip_gen: v6e
topology: v6e:2x2x1
jax: 0.10.0
libtpu: 0.0.40
codegen_flags: <defaults>
</compile_context>

<pallas_src>
import functools

import jax
import jax.numpy as jnp
from jax import lax
from jax.experimental import pallas as pl
from jax.experimental.pallas import tpu as pltpu

EPS = 1e-07


def _contrast_kernel(x_ref, out_ref, acc_ref, *, c, bsz, tb, nb_per, needs_mask):
    ci = pl.program_id(0)          # batch-split ("parallel") index
    ti = pl.program_id(1)          # batch-tile index within the split
    tile_start = (ci * nb_per + ti) * tb

    @pl.when(ti == 0)
    def _init():
        acc_ref[0] = jnp.float32(0.0)   # sum log(P_pos / (P_pos + c))
        acc_ref[1] = jnp.float32(0.0)   # sum 1/(x + c) over ALL columns
        acc_ref[2] = jnp.float32(0.0)   # sum 1/(x0 + c) over column 0 only

    x = x_ref[...].astype(jnp.float32)                 # (tb, K+1)
    denom = x + c
    # Approx reciprocal on the otherwise-idle EUP + one Newton-Raphson step
    # (~f32 accuracy for ~3 VPU ops/element instead of the exact refinement).
    inv = pl.reciprocal(denom, approx=True)
    inv = inv * (jnp.float32(2.0) - denom * inv)
    # Positive column only: exact divide (B elements, not B*(K+1)).
    ratio0 = x[:, 0:1] / denom[:, 0:1]                 # (tb, 1)

    def _accumulate(inv_v, ratio0_v):
        acc_ref[0] += jnp.sum(jnp.log(ratio0_v))
        acc_ref[1] += jnp.sum(inv_v)
        acc_ref[2] += jnp.sum(inv_v[:, 0:1])

    if needs_mask:
        # Only tiles overhanging the end of the batch pay for masking.
        is_full = tile_start + tb <= bsz

        @pl.when(is_full)
        def _full_tile():
            _accumulate(inv, ratio0)

        @pl.when(jnp.logical_not(is_full))
        def _tail_tile():
            rid = lax.broadcasted_iota(jnp.int32, (tb, 1), 0) + tile_start
            ok = rid < bsz                              # (tb, 1) row mask
            _accumulate(jnp.where(ok, inv, 0.0), jnp.where(ok, ratio0, 1.0))
    else:
        _accumulate(inv, ratio0)

    @pl.when(ti == pl.num_programs(1) - 1)
    def _finalize():
        # Emit this split's three partial sums on sublanes 0..2 of its block.
        sub = lax.broadcasted_iota(jnp.int32, out_ref.shape, 1)
        blk = jnp.where(sub == 0, acc_ref[0],
              jnp.where(sub == 1, acc_ref[1],
              jnp.where(sub == 2, acc_ref[2], jnp.float32(0.0))))
        out_ref[...] = blk


def contrast_criterion(x, n_data, *, row_block_bytes=8 << 20, num_core_splits=2):
    """Pallas implementation of ContrastCriterion.forward.

    x: (B, K+1) or (B, K+1, 1) scores. Returns the loss with shape (1,), f32.
    """
    if x.ndim == 3:
        x = x[..., 0]
    B, K1 = x.shape
    m = K1 - 1
    pn = 1.0 / float(n_data)
    c = float(m) * pn + EPS

    itemsize = jnp.dtype(x.dtype).itemsize
    # Sublane packing multiple: 8 (f32) / 16 (bf16) / 32 (8-bit dtypes).
    mult = 8 * max(1, 4 // itemsize)

    # Per-input-buffer byte budget; with double buffering and no large VMEM
    # scratch this stays inside every generation's VMEM (incl. v7x's 64 MiB).
    row_block_bytes = min(int(row_block_bytes), 20 << 20)
    bytes_per_row = K1 * itemsize
    tb_cap = max(mult, (row_block_bytes // bytes_per_row) // mult * mult)
    if B <= tb_cap:
        tb = B                                    # block == full dim is always legal
    else:
        # Balance the tail: ~equal tiles, rounded up to the packing multiple.
        nb_est = pl.cdiv(B, tb_cap)
        tb = pl.cdiv(pl.cdiv(B, nb_est), mult) * mult

    nb = pl.cdiv(B, tb)                           # number of batch tiles
    S = max(1, min(int(num_core_splits), nb))     # "parallel" batch-split axis
    nb_per = pl.cdiv(nb, S)
    needs_mask = (S * nb_per * tb) != B           # static: mask only if needed

    kernel = functools.partial(
        _contrast_kernel, c=c, bsz=B, tb=tb, nb_per=nb_per, needs_mask=needs_mask)

    tile_bytes = tb * K1 * itemsize
    vmem_limit = min(2 * tile_bytes + (4 << 20), 60 << 20)

    partial = pl.pallas_call(
        kernel,
        out_shape=jax.ShapeDtypeStruct((S, 8, 128), jnp.float32),
        grid_spec=pltpu.PrefetchScalarGridSpec(
            num_scalar_prefetch=0,
            grid=(S, nb_per),
            in_specs=[pl.BlockSpec(
                (tb, K1),
                # Clamp so an overhanging tile of the last split never indexes
                # past the array; its rows are masked out in-kernel.
                lambda s, i: (jnp.minimum(s * nb_per + i, nb - 1), 0))],
            out_specs=pl.BlockSpec((1, 8, 128), lambda s, i: (s, 0, 0)),
            scratch_shapes=[pltpu.SMEM((3,), jnp.float32)],
        ),
        compiler_params=pltpu.CompilerParams(
            dimension_semantics=("parallel", "arbitrary"),
            vmem_limit_bytes=vmem_limit,
        ),
    )(x)  # input DMA'd at its own width; cast to f32 happens in-kernel

    # Combine the per-split partial sums (a handful of scalar XLA ops).
    pos_sum = jnp.sum(partial[:, 0, 0])
    inv_all = jnp.sum(partial[:, 1, 0])
    inv_c0 = jnp.sum(partial[:, 2, 0])
    neg_sum = jnp.float32(m * pn) * (inv_all - inv_c0)    # sum over the P_neg block
    log_d0 = jnp.log(neg_sum / jnp.float32(B * m))        # torch.avg -> mean, then log
    loss = -(pos_sum + log_d0) / jnp.float32(B)
    return loss.reshape(1)                                # shape (1,), like torch


def _reference(x, n_data):
    if x.ndim == 3:
        x = x[..., 0]
    x = x.astype(jnp.float32)
    B, K1 = x.shape
    m = K1 - 1
    pn = 1.0 / float(n_data)
    c = m * pn + EPS
    p_pos = x[:, 0]
    log_d1 = jnp.log(p_pos / (p_pos + c))
    p_neg = x[:, 1:]
    log_d0 = jnp.log(jnp.mean((m * pn) / (p_neg + c)))
    return (-(jnp.sum(log_d1) + log_d0) / B).reshape(1)


if __name__ == "__main__":
    n_data = 4096

    # Main check: (B, K+1, 1) input exactly as the torch module receives it
    # (1 positive + 128 negative scores per row).
    B, K1 = 8, 129
    x = jax.random.uniform(jax.random.PRNGKey(0), (B, K1, 1), dtype=jnp.float32,
                           minval=1e-3, maxval=1.0)
    loss = contrast_criterion(x, n_data)
    jax.block_until_ready(loss)
    ref = _reference(x, n_data)
    assert loss.shape == (1,)
    assert jnp.allclose(loss, ref, rtol=1e-5, atol=1e-5), (loss, ref)

    # Second check: tiny forced tile to exercise the multi-tile grid, the
    # 2-way "parallel" batch split, and the masked tail path (B % tb != 0).
    B2, K12 = 20, 64
    x2 = jax.random.uniform(jax.random.PRNGKey(1), (B2, K12), dtype=jnp.float32,
                            minval=1e-3, maxval=1.0)
    loss2 = contrast_criterion(x2, n_data, row_block_bytes=1)   # -> tb = 8
    jax.block_until_ready(loss2)
    ref2 = _reference(x2, n_data)
    assert loss2.shape == (1,)
    assert jnp.allclose(loss2, ref2, rtol=1e-5, atol=1e-5), (loss2, ref2)

    print("KERNEL_OK")
</pallas_src>

<mosaic_0001>
module attributes {stable_mosaic.version = 11 : i64} {
  func.func @_contrast_kernel(%arg0: i32, %arg1: i32, %arg2: memref<8x129xf32, #tpu.memory_space<vmem>>, %arg3: memref<1x8x128xf32, #tpu.memory_space<vmem>>, %arg4: memref<3xf32, #tpu.memory_space<smem>>) attributes {dimension_semantics = [#tpu.dimension_semantics<parallel>, #tpu.dimension_semantics<arbitrary>], iteration_bounds = array<i64: 1, 1>, scalar_prefetch = 0 : i64, scratch_operands = 1 : i64, tpu.core_type = #tpu.core_type<tc>, window_params = [{transform_indices = @transform_0, window_bounds = array<i64: 8, 129>}, {transform_indices = @transform_1, window_bounds = array<i64: 1, 8, 128>}]} {
    %c0_i32 = arith.constant 0 : i32
    %0 = arith.cmpi eq, %arg1, %c0_i32 : i32
    %1 = arith.extui %0 : i1 to i32
    %c0_i32_0 = arith.constant 0 : i32
    %2 = arith.cmpi ne, %1, %c0_i32_0 : i32
    scf.if %2 {
      %cst_12 = arith.constant 0.000000e+00 : f32
      %c0_13 = arith.constant 0 : index
      %40 = memref.load %arg4[%c0_13] : memref<3xf32, #tpu.memory_space<smem>>
      memref.store %cst_12, %arg4[%c0_13] : memref<3xf32, #tpu.memory_space<smem>>
      %cst_14 = arith.constant 0.000000e+00 : f32
      %c1_15 = arith.constant 1 : index
      %41 = memref.load %arg4[%c1_15] : memref<3xf32, #tpu.memory_space<smem>>
      memref.store %cst_14, %arg4[%c1_15] : memref<3xf32, #tpu.memory_space<smem>>
      %cst_16 = arith.constant 0.000000e+00 : f32
      %c2_17 = arith.constant 2 : index
      %42 = memref.load %arg4[%c2_17] : memref<3xf32, #tpu.memory_space<smem>>
      memref.store %cst_16, %arg4[%c2_17] : memref<3xf32, #tpu.memory_space<smem>>
    } else {
    }
    %c0 = arith.constant 0 : index
    %c0_1 = arith.constant 0 : index
    %3 = vector.load %arg2[%c0, %c0_1] : memref<8x129xf32, #tpu.memory_space<vmem>>, vector<8x129xf32>
    %cst = arith.constant 3.125010e-02 : f32
    %4 = vector.broadcast %cst : f32 to vector<8x129xf32>
    %5 = arith.addf %3, %4 : vector<8x129xf32>
    %6 = tpu.reciprocal %5 {approx = true} : vector<8x129xf32> -> vector<8x129xf32>
    %7 = arith.mulf %5, %6 : vector<8x129xf32>
    %cst_2 = arith.constant 2.000000e+00 : f32
    %8 = vector.broadcast %cst_2 : f32 to vector<8x129xf32>
    %9 = arith.subf %8, %7 : vector<8x129xf32>
    %10 = arith.mulf %6, %9 : vector<8x129xf32>
    %11 = vector.extract_strided_slice %3 {offsets = [0, 0], sizes = [8, 1], strides = [1, 1]} : vector<8x129xf32> to vector<8x1xf32>
    %12 = vector.extract_strided_slice %5 {offsets = [0, 0], sizes = [8, 1], strides = [1, 1]} : vector<8x129xf32> to vector<8x1xf32>
    %13 = arith.divf %11, %12 : vector<8x1xf32>
    %c0_3 = arith.constant 0 : index
    %14 = memref.load %arg4[%c0_3] : memref<3xf32, #tpu.memory_space<smem>>
    %15 = math.log %13 : vector<8x1xf32>
    %16 = vector.shape_cast %15 : vector<8x1xf32> to vector<1x8x1xf32>
    %cst_4 = arith.constant dense<0.000000e+00> : vector<1xf32>
    %17 = vector.multi_reduction <add>, %16, %cst_4 [1, 2] : vector<1x8x1xf32> to vector<1xf32>
    %18 = vector.shape_cast %17 : vector<1xf32> to vector<1x1x1xf32>
    %19 = vector.extract %18[0, 0, 0] : f32 from vector<1x1x1xf32>
    %20 = arith.addf %14, %19 : f32
    %c0_5 = arith.constant 0 : index
    %21 = memref.load %arg4[%c0_5] : memref<3xf32, #tpu.memory_space<smem>>
    memref.store %20, %arg4[%c0_5] : memref<3xf32, #tpu.memory_space<smem>>
    %c1 = arith.constant 1 : index
    %22 = memref.load %arg4[%c1] : memref<3xf32, #tpu.memory_space<smem>>
    %23 = vector.shape_cast %10 : vector<8x129xf32> to vector<1x8x129xf32>
    %cst_6 = arith.constant dense<0.000000e+00> : vector<1xf32>
    %24 = vector.multi_reduction <add>, %23, %cst_6 [1, 2] : vector<1x8x129xf32> to vector<1xf32>
    %25 = vector.shape_cast %24 : vector<1xf32> to vector<1x1x1xf32>
    %26 = vector.extract %25[0, 0, 0] : f32 from vector<1x1x1xf32>
    %27 = arith.addf %22, %26 : f32
    %c1_7 = arith.constant 1 : index
    %28 = memref.load %arg4[%c1_7] : memref<3xf32, #tpu.memory_space<smem>>
    memref.store %27, %arg4[%c1_7] : memref<3xf32, #tpu.memory_space<smem>>
    %c2 = arith.constant 2 : index
    %29 = memref.load %arg4[%c2] : memref<3xf32, #tpu.memory_space<smem>>
    %30 = vector.extract_strided_slice %10 {offsets = [0, 0], sizes = [8, 1], strides = [1, 1]} : vector<8x129xf32> to vector<8x1xf32>
    %31 = vector.shape_cast %30 : vector<8x1xf32> to vector<1x8x1xf32>
    %cst_8 = arith.constant dense<0.000000e+00> : vector<1xf32>
    %32 = vector.multi_reduction <add>, %31, %cst_8 [1, 2] : vector<1x8x1xf32> to vector<1xf32>
    %33 = vector.shape_cast %32 : vector<1xf32> to vector<1x1x1xf32>
    %34 = vector.extract %33[0, 0, 0] : f32 from vector<1x1x1xf32>
    %35 = arith.addf %29, %34 : f32
    %c2_9 = arith.constant 2 : index
    %36 = memref.load %arg4[%c2_9] : memref<3xf32, #tpu.memory_space<smem>>
    memref.store %35, %arg4[%c2_9] : memref<3xf32, #tpu.memory_space<smem>>
    %c0_i32_10 = arith.constant 0 : i32
    %37 = arith.cmpi eq, %arg1, %c0_i32_10 : i32
    %38 = arith.extui %37 : i1 to i32
    %c0_i32_11 = arith.constant 0 : i32
    %39 = arith.cmpi ne, %38, %c0_i32_11 : i32
    scf.if %39 {
      %40 = tpu.iota {dimensions = array<i32: 1>} : vector<1x8x128xi32>
      %c0_i32_12 = arith.constant 0 : i32
      %41 = vector.broadcast %c0_i32_12 : i32 to vector<1x8x128xi32>
      %42 = arith.cmpi eq, %40, %41 : vector<1x8x128xi32>
      %c0_13 = arith.constant 0 : index
      %43 = memref.load %arg4[%c0_13] : memref<3xf32, #tpu.memory_space<smem>>
      %c1_i32 = arith.constant 1 : i32
      %44 = vector.broadcast %c1_i32 : i32 to vector<1x8x128xi32>
      %45 = arith.cmpi eq, %40, %44 : vector<1x8x128xi32>
      %c1_14 = arith.constant 1 : index
      %46 = memref.load %arg4[%c1_14] : memref<3xf32, #tpu.memory_space<smem>>
      %c2_i32 = arith.constant 2 : i32
      %47 = vector.broadcast %c2_i32 : i32 to vector<1x8x128xi32>
      %48 = arith.cmpi eq, %40, %47 : vector<1x8x128xi32>
      %c2_15 = arith.constant 2 : index
      %49 = memref.load %arg4[%c2_15] : memref<3xf32, #tpu.memory_space<smem>>
      %cst_16 = arith.constant 0.000000e+00 : f32
      %50 = vector.broadcast %49 : f32 to vector<1x8x128xf32>
      %51 = vector.broadcast %cst_16 : f32 to vector<1x8x128xf32>
      %52 = arith.select %48, %50, %51 : vector<1x8x128xi1>, vector<1x8x128xf32>
      %53 = vector.broadcast %46 : f32 to vector<1x8x128xf32>
      %54 = arith.select %45, %53, %52 : vector<1x8x128xi1>, vector<1x8x128xf32>
      %55 = vector.broadcast %43 : f32 to vector<1x8x128xf32>
      %56 = arith.select %42, %55, %54 : vector<1x8x128xi1>, vector<1x8x128xf32>
      %c0_17 = arith.constant 0 : index
      %c0_18 = arith.constant 0 : index
      %c0_19 = arith.constant 0 : index
      %57 = vector.load %arg3[%c0_17, %c0_18, %c0_19] : memref<1x8x128xf32, #tpu.memory_space<vmem>>, vector<1x8x128xf32>
      tpu.vector_store %arg3[%c0_17, %c0_18, %c0_19], %56 {strides = array<i32>} : memref<1x8x128xf32, #tpu.memory_space<vmem>>, vector<1x8x128xf32>,
    } else {
    }
    return
  }
  func.func @transform_0(%arg0: i32, %arg1: i32) -> (i32, i32) {
    %c1_i32 = arith.constant 1 : i32
    %0 = arith.muli %arg0, %c1_i32 : i32
    %1 = arith.addi %0, %arg1 : i32
    %c0_i32 = arith.constant 0 : i32
    %2 = arith.minsi %1, %c0_i32 : i32
    %c0_i32_0 = arith.constant 0 : i32
    %c0_i32_1 = arith.constant 0 : i32
    return %2, %c0_i32_0 : i32, i32
  }
  func.func @transform_1(%arg0: i32, %arg1: i32) -> (i32, i32, i32) {
    %c0_i32 = arith.constant 0 : i32
    %c0_i32_0 = arith.constant 0 : i32
    %c0_i32_1 = arith.constant 0 : i32
    return %arg0, %c0_i32, %c0_i32_0 : i32, i32, i32
  }
}

</mosaic_0001>

<bundles_post_ra>
// kernel: tpu_custom_call.1
= control target key start
LH: loop header
LB: loop body
LE: loop exit
PB: predicated region body
PF: predicated region fallthrough
CT: control target
= control target key end

     0   :  { %6 = vsyncpa [#allocation4], 0  ;;  %s215_s0 = inlined_call_operand.hbm [shape: f32[8,129], index: 0, kind: input, shape index: {}]   ;;  %s216_s1 = inlined_call_operand.hbm [shape: f32[1,8,128], index: 1, kind: output, shape index: {}]  }
   0x1   :  { %7 = vsyncpa [#allocation5], 0  ;;  %s197_s6 = smov [#allocation3]  }
   0x2   :  { %s20_s7 = sshll.u32 %s197_s6, 4  ;;  %s21_s7 = int_to_ptr.vmem [resolvable:$true] %s20_s7 }
   0x3   :  { %s161_s8 = scalar_lea.vmem %s21_s7, 256  ;;  %p166_p1 = scmp.lt.s32.totalorder %s21_s7, %s21_s7 }
   0x4   :  { %p162_p0 = scmp.ne.s32.totalorder %s21_s7, %s161_s8  ;;  %p167_p2 = scmp.lt.s32.totalorder %s161_s8, %s161_s8 }
   0x6   :  { %p168_p3 = por %p167_p2, %p166_p1 }
   0x8   :  { %p169_p4 = pnand %p168_p3, %p162_p0 }
   0xa   :  { %172 = shalt.err (!%p169_p4)
}
   0xb   :  { %23 = dma.hbm_to_vmem [thread:$0]  %s215_s0, 256, %s21_s7, [#allocation4]  }
   0xc   :  { %193 = dma.done.wait [#allocation4], 256  }
   0xd   :  { %194 = vsyncadd [#allocation4], 4294967040  ;;  %v40_v0 = vld [vmem:[#allocation3] sm:$0xff]  ;;  %v41_v1 = vld [vmem:[#allocation3 + $0x8] sm:$0xff]  ;;  %vm57_vm0 = vcmask 7168   ;;  %v103_v40 = vlaneseq  ;;  %s198_s13 = smov [#allocation6]  }
   0xe   :  { %v42_v2 = vadd.f32 0.0312501, %v40_v0  ;;  %v43_v3 = vadd.f32 0.0312501, %v41_v1  ;;  %s124_s14 = sshll.u32 %s198_s13, 4  ;;  %s125_s14 = int_to_ptr.vmem [resolvable:$true] %s124_s14 }
   0xf   :  { %v104_v41 = vshrl.u32 %v103_v40, 7  ;;  %s173_s15 = scalar_lea.vmem %s125_s14, 128  ;;  %p178_p6 = scmp.lt.s32.totalorder %s125_s14, %s125_s14 }
  0x10   :  { %147 = vrcp.f32 %v42_v2  ;;  %p174_p5 = scmp.ne.s32.totalorder %s125_s14, %s173_s15  ;;  %p179_p7 = scmp.lt.s32.totalorder %s173_s15, %s173_s15 }
  0x11   :  { %149 = vrcp.f32 %v43_v3  ;;  %vm109_vm1 = vcmp.eq.s32.totalorder %v104_v41, 2  ;;  %vm107_vm2 = vcmp.eq.s32.totalorder %v104_v41, 1  ;;  %vm105_vm3 = vcmp.eq.s32.totalorder %v104_v41, 0 }
  0x12   :  { %p180_p8 = por %p179_p7, %p178_p6 }
  0x14   :  { %p181_p9 = pnand %p180_p8, %p174_p5 }
  0x1d   :  { %v148_v4 = vpop.eup %147 }
  0x1e   :  { %v46_v5 = vmul.f32 %v148_v4, %v42_v2  ;;  %v53_v6 = vmul.f32 %v148_v4, %v40_v0  ;;  %v150_v7 = vpop.eup %149 }
  0x1f   :  { %v47_v10 = vmul.f32 %v150_v7, %v43_v3 }
  0x20   :  { %v48_v8 = vsub.f32 2.0, %v46_v5  ;;  %151 = vlog2.f32 %v53_v6 }
  0x21   :  { %v49_v12 = vsub.f32 2.0, %v47_v10 }
  0x22   :  { %v50_v9 = vmul.f32 %v148_v4, %v48_v8 }
  0x23   :  { %v51_v13 = vmul.f32 %v150_v7, %v49_v12 }
  0x24   :  { %v87_v11 = vsel %vm57_vm0, %v50_v9, 0.0 }
  0x25   :  { %88 = vadd.xlane.f32.xlu1 %v87_v11  ;;  %v72_v16 = vsel %vm57_vm0, %v51_v13, 0.0 }
  0x26   :  { %v73_v18 = vadd.f32 %v72_v16, %v50_v9 }
  0x2d   :  { %v152_v14 = vpop.eup %151 }
  0x2e   :  { %v56_v15 = vmul.f32 0.6931472, %v152_v14 }
  0x30   :  { %v58_v17 = vsel %vm57_vm0, %v56_v15, 0.0 }
  0x31   :  { %59 = vadd.xlane.f32.xlu0 %v58_v17 }
  0x35   :  { %74 = vadd.xlane.f32.xlu0 %v73_v18 }
  0xae   :  { %v89_v19 = vpop.xlane.xlu1 %88 }
  0xaf   :  { %v90_v20 = vrot.slane %v89_v19, 4 }
  0xb1   :  { %v91_v21 = vadd.f32 %v90_v20, %v89_v19 }
  0xb3   :  { %v92_v25 = vrot.slane %v91_v21, 2 }
  0xb5   :  { %v93_v31 = vadd.f32 %v92_v25, %v91_v21 }
  0xb7   :  { %v94_v36 = vrot.slane %v93_v31, 1 }
  0xb9   :  { %v95_v39 = vadd.f32 %v94_v36, %v93_v31 }
  0xba   :  { %v60_v22 = vpop.xlane.xlu0 %59 }
  0xbb   :  { %v61_v23 = vrot.slane %v60_v22, 4 }
  0xbd   :  { %v62_v24 = vadd.f32 %v61_v23, %v60_v22 }
  0xbe   :  { %v75_v26 = vpop.xlane.xlu0 %74 }
  0xbf   :  { %v63_v27 = vrot.slane %v62_v24, 2  ;;  %v76_v28 = vrot.slane %v75_v26, 4 }
  0xc1   :  { %v77_v29 = vadd.f32 %v76_v28, %v75_v26  ;;  %v64_v30 = vadd.f32 %v63_v27, %v62_v24 }
  0xc3   :  { %v78_v32 = vrot.slane %v77_v29, 2  ;;  %v65_v33 = vrot.slane %v64_v30, 1 }
  0xc5   :  { %v79_v34 = vadd.f32 %v78_v32, %v77_v29  ;;  %v66_v35 = vadd.f32 %v65_v33, %v64_v30 }
  0xc7   :  { %139 = vpush %v66_v35  ;;  %v80_v37 = vrot.slane %v79_v34, 1 }
  0xc9   :  { %v81_v38 = vadd.f32 %v80_v37, %v79_v34 }
  0xcb   :  { %141 = vpush %v81_v38 }
  0xcc   :  { %143 = vpush %v95_v39 }
  0xf8   :  { %s140_s0 = spop %139 }
  0xf9   :  { %v115_v45 = vstv %s140_s0 }
  0xfc   :  { %s142_s11 = spop %141 }
  0xfd   :  { %v113_v42 = vstv %s142_s11  ;;  %s144_s12 = spop %143 }
  0xfe   :  { %v111_v43 = vstv %s144_s12 }
  0xff   :  { %v112_v44 = vsel %vm109_vm1, %v111_v43, 0.0 }
 0x100   :  { %v114_v46 = vsel %vm107_vm2, %v113_v42, %v112_v44 }
 0x101   :  { %v116_v47 = vsel %vm105_vm3, %v115_v45, %v114_v46 }
 0x102   :  { %117 = vst [vmem:[#allocation6] sm:$0xff] %v116_v47 }
 0x103   :  { %184 = shalt.err (!%p181_p9)
}
 0x104   :  { %127 = dma.vmem_to_hbm [thread:$0]  %s125_s14, 128, %s216_s1, [#allocation5]  }
 0x105   :  { %195 = dma.done.wait [#allocation5], 128  }
 0x106   :  { %196 = vsyncadd [#allocation5], 4294967168 }
 0x107   :  { %131 = vsyncpa [#allocation4], 1 }
 0x108   :  { %132 = vsyncpa [#allocation5], 1 }

</bundles_post_ra>
